<compile_context>
chip_gen: v7x
topology: tpu7x:2x2x1
jax: 0.10.0
libtpu: 0.0.40
codegen_flags: <defaults>
</compile_context>

<pallas_src>
import jax
import jax.numpy as jnp
from jax import lax
from jax.experimental import pallas as pl
from jax.experimental.pallas import tpu as pltpu

LANE = 128              # lane width: last dim of every block
TARGET_ROW_BLK = 2048   # 2048 x 128 f32 = 1 MiB per block


def _make_fused_kernel(row_blk, rows, n_elems):
    """Build the fused abs-mean + ternary-quantize kernel (statics via closure)."""
    uneven = (rows % row_blk) != 0
    scale_const = 1.4 / float(n_elems)   # folded compile-time constant

    def kernel(x_ref, o_ref, acc_ref, scale_ref):
        phase = pl.program_id(0)          # 0: |x| reduction, 1: quantize
        tile = pl.program_id(1)
        n_tiles = pl.num_programs(1)

        # ---------- phase 0: per-lane partial sums of |x| ----------
        @pl.when((phase == 0) & (tile == 0))
        def _init():
            acc_ref[...] = jnp.zeros_like(acc_ref)

        @pl.when(phase == 0)
        def _accumulate():
            xa = jnp.abs(x_ref[...].astype(jnp.float32))
            if uneven:
                # The last block runs past the true row extent; mask those rows
                # (their contents are unspecified). Padded zeros within the last
                # valid row contribute nothing, so no element-level mask needed.
                row = tile * row_blk + lax.broadcasted_iota(
                    jnp.int32, (row_blk, LANE), 0)
                xa = jnp.where(row < rows, xa, 0.0)
            acc_ref[...] += jnp.sum(xa, axis=0, keepdims=True)

        @pl.when((phase == 0) & (tile == n_tiles - 1))
        def _finalize_scale():
            # scale = 1.4 * sum(|x|) / numel   (one cross-lane reduce, once)
            scale_ref[0, 0] = jnp.sum(acc_ref[...] * jnp.float32(scale_const))

        # ---------- phase 1: elementwise ternary quantization ----------
        @pl.when(phase == 1)
        def _quantize():
            s = scale_ref[0, 0]
            xq = x_ref[...].astype(jnp.float32)
            q = jnp.clip(jnp.round(xq / s), -1.0, 1.0)
            o_ref[...] = (s * q).astype(o_ref.dtype)

    return kernel


def ternary_quantize(x):
    """Pallas TPU implementation of TernaryQuantization.forward."""
    orig_shape = x.shape
    orig_dtype = x.dtype
    n = x.size

    xf = jnp.ravel(x)
    lane_pad = (-n) % LANE
    if lane_pad:
        # Only hit when numel is not a multiple of 128 (rare for conv/linear
        # activations); zero padding does not perturb the |x| sum.
        xf = jnp.pad(xf, (0, lane_pad))
    rows = xf.size // LANE
    x2d = xf.reshape(rows, LANE)     # reshape of a contiguous ravel is free

    # Largest sublane-aligned row block up to the target.
    row_blk = min(TARGET_ROW_BLK, ((rows + 7) // 8) * 8)
    n_tiles = pl.cdiv(rows, row_blk)

    out2d = pl.pallas_call(
        _make_fused_kernel(row_blk, rows, n),
        out_shape=jax.ShapeDtypeStruct((rows, LANE), orig_dtype),
        grid=(2, n_tiles),
        in_specs=[pl.BlockSpec((row_blk, LANE), lambda p, i: (i, 0))],
        # Pin the output on block 0 during phase 0 (it is never written there,
        # so nothing gets flushed); phase 1 walks the blocks and writes each once.
        out_specs=pl.BlockSpec((row_blk, LANE), lambda p, i: (i * p, 0)),
        scratch_shapes=[
            pltpu.VMEM((1, LANE), jnp.float32),   # per-lane |x| accumulator
            pltpu.SMEM((1, 1), jnp.float32),      # scale scalar
        ],
        compiler_params=pltpu.CompilerParams(
            # phase ordering and the running reduction are order-dependent.
            # TODO(synk): on v7x, split the grid across the 2 TensorCores
            # (per-core partial sums + CORE_PARALLEL quantize) for up to ~2x.
            dimension_semantics=("arbitrary", "arbitrary")),
    )(x2d)

    out = out2d
    if lane_pad:
        out = out.ravel()[:n]
    return out.reshape(orig_shape)


def _reference(x):
    # Pure-JAX reference mirroring the PyTorch forward exactly.
    x32 = x.astype(jnp.float32)
    scale = 1.4 * jnp.mean(jnp.abs(x32))
    return (scale * jnp.clip(jnp.round(x32 / scale), -1.0, 1.0)).astype(x.dtype)


if __name__ == "__main__":
    key = jax.random.PRNGKey(0)
    # Small NCHW-like input consistent with a conv-activation quantizer.
    x = jax.random.normal(key, (2, 4, 16, 16), dtype=jnp.float32)

    out = jax.block_until_ready(ternary_quantize(x))

    ref = _reference(x)
    assert out.shape == x.shape and out.dtype == x.dtype
    assert jnp.allclose(out, ref, atol=1e-6, rtol=1e-6), "mismatch vs reference"

    print("KERNEL_OK")
</pallas_src>

<mosaic_0001>
module attributes {stable_mosaic.version = 11 : i64} {
  func.func @kernel(%arg0: i32, %arg1: i32, %arg2: memref<16x128xf32, #tpu.memory_space<vmem>>, %arg3: memref<16x128xf32, #tpu.memory_space<vmem>>, %arg4: memref<1x128xf32, #tpu.memory_space<vmem>>, %arg5: memref<1x1xf32, #tpu.memory_space<smem>>) attributes {dimension_semantics = [#tpu.dimension_semantics<arbitrary>, #tpu.dimension_semantics<arbitrary>], iteration_bounds = array<i64: 2, 1>, scalar_prefetch = 0 : i64, scratch_operands = 2 : i64, tpu.core_type = #tpu.core_type<tc>, window_params = [{transform_indices = @transform_0, window_bounds = array<i64: 16, 128>}, {transform_indices = @transform_1, window_bounds = array<i64: 16, 128>}]} {
    %c0_i32 = arith.constant 0 : i32
    %0 = arith.cmpi eq, %arg0, %c0_i32 : i32
    %c0_i32_0 = arith.constant 0 : i32
    %1 = arith.cmpi eq, %arg1, %c0_i32_0 : i32
    %2 = arith.andi %0, %1 : i1
    %3 = arith.extui %2 : i1 to i32
    %c0_i32_1 = arith.constant 0 : i32
    %4 = arith.cmpi ne, %3, %c0_i32_1 : i32
    scf.if %4 {
      %cst = arith.constant 0.000000e+00 : f32
      %16 = vector.broadcast %cst : f32 to vector<1x128xf32>
      %c0 = arith.constant 0 : index
      %c0_8 = arith.constant 0 : index
      %17 = vector.load %arg4[%c0, %c0_8] : memref<1x128xf32, #tpu.memory_space<vmem>>, vector<1x128xf32>
      tpu.vector_store %arg4[%c0, %c0_8], %16 {strides = array<i32>} : memref<1x128xf32, #tpu.memory_space<vmem>>, vector<1x128xf32>,
    } else {
    }
    %c0_i32_2 = arith.constant 0 : i32
    %5 = arith.cmpi eq, %arg0, %c0_i32_2 : i32
    %6 = arith.extui %5 : i1 to i32
    %c0_i32_3 = arith.constant 0 : i32
    %7 = arith.cmpi ne, %6, %c0_i32_3 : i32
    scf.if %7 {
      %c0 = arith.constant 0 : index
      %c0_8 = arith.constant 0 : index
      %16 = vector.load %arg2[%c0, %c0_8] : memref<16x128xf32, #tpu.memory_space<vmem>>, vector<16x128xf32>
      %17 = math.absf %16 : vector<16x128xf32>
      %c0_9 = arith.constant 0 : index
      %c0_10 = arith.constant 0 : index
      %18 = vector.load %arg4[%c0_9, %c0_10] : memref<1x128xf32, #tpu.memory_space<vmem>>, vector<1x128xf32>
      %cst = arith.constant dense<0.000000e+00> : vector<128xf32>
      %19 = vector.multi_reduction <add>, %17, %cst [0] : vector<16x128xf32> to vector<128xf32>
      %20 = vector.shape_cast %19 : vector<128xf32> to vector<1x128xf32>
      %21 = arith.addf %18, %20 : vector<1x128xf32>
      %c0_11 = arith.constant 0 : index
      %c0_12 = arith.constant 0 : index
      %22 = vector.load %arg4[%c0_11, %c0_12] : memref<1x128xf32, #tpu.memory_space<vmem>>, vector<1x128xf32>
      tpu.vector_store %arg4[%c0_11, %c0_12], %21 {strides = array<i32>} : memref<1x128xf32, #tpu.memory_space<vmem>>, vector<1x128xf32>,
    } else {
    }
    %c0_i32_4 = arith.constant 0 : i32
    %8 = arith.cmpi eq, %arg0, %c0_i32_4 : i32
    %c0_i32_5 = arith.constant 0 : i32
    %9 = arith.cmpi eq, %arg1, %c0_i32_5 : i32
    %10 = arith.andi %8, %9 : i1
    %11 = arith.extui %10 : i1 to i32
    %c0_i32_6 = arith.constant 0 : i32
    %12 = arith.cmpi ne, %11, %c0_i32_6 : i32
    scf.if %12 {
      %c0 = arith.constant 0 : index
      %c0_8 = arith.constant 0 : index
      %16 = vector.load %arg4[%c0, %c0_8] : memref<1x128xf32, #tpu.memory_space<vmem>>, vector<1x128xf32>
      %cst = arith.constant 6.83593738E-4 : f32
      %17 = vector.broadcast %cst : f32 to vector<1x128xf32>
      %18 = arith.mulf %16, %17 : vector<1x128xf32>
      %19 = vector.shape_cast %18 : vector<1x128xf32> to vector<1x1x128xf32>
      %cst_9 = arith.constant dense<0.000000e+00> : vector<1xf32>
      %20 = vector.multi_reduction <add>, %19, %cst_9 [1, 2] : vector<1x1x128xf32> to vector<1xf32>
      %21 = vector.shape_cast %20 : vector<1xf32> to vector<1x1x1xf32>
      %22 = vector.extract %21[0, 0, 0] : f32 from vector<1x1x1xf32>
      %c0_10 = arith.constant 0 : index
      %c0_11 = arith.constant 0 : index
      %23 = memref.load %arg5[%c0_10, %c0_11] : memref<1x1xf32, #tpu.memory_space<smem>>
      memref.store %22, %arg5[%c0_10, %c0_11] : memref<1x1xf32, #tpu.memory_space<smem>>
    } else {
    }
    %c1_i32 = arith.constant 1 : i32
    %13 = arith.cmpi eq, %arg0, %c1_i32 : i32
    %14 = arith.extui %13 : i1 to i32
    %c0_i32_7 = arith.constant 0 : i32
    %15 = arith.cmpi ne, %14, %c0_i32_7 : i32
    scf.if %15 {
      %c0 = arith.constant 0 : index
      %c0_8 = arith.constant 0 : index
      %16 = memref.load %arg5[%c0, %c0_8] : memref<1x1xf32, #tpu.memory_space<smem>>
      %c0_9 = arith.constant 0 : index
      %c0_10 = arith.constant 0 : index
      %17 = vector.load %arg2[%c0_9, %c0_10] : memref<16x128xf32, #tpu.memory_space<vmem>>, vector<16x128xf32>
      %18 = vector.broadcast %16 : f32 to vector<16x128xf32>
      %19 = arith.divf %17, %18 : vector<16x128xf32>
      %20 = math.roundeven %19 : vector<16x128xf32>
      %cst = arith.constant -1.000000e+00 : f32
      %cst_11 = arith.constant 1.000000e+00 : f32
      %21 = vector.broadcast %cst : f32 to vector<16x128xf32>
      %22 = arith.maximumf %21, %20 : vector<16x128xf32>
      %23 = vector.broadcast %cst_11 : f32 to vector<16x128xf32>
      %24 = arith.minimumf %23, %22 : vector<16x128xf32>
      %25 = vector.broadcast %16 : f32 to vector<16x128xf32>
      %26 = arith.mulf %25, %24 : vector<16x128xf32>
      %c0_12 = arith.constant 0 : index
      %c0_13 = arith.constant 0 : index
      %27 = vector.load %arg3[%c0_12, %c0_13] : memref<16x128xf32, #tpu.memory_space<vmem>>, vector<16x128xf32>
      tpu.vector_store %arg3[%c0_12, %c0_13], %26 {strides = array<i32>} : memref<16x128xf32, #tpu.memory_space<vmem>>, vector<16x128xf32>,
    } else {
    }
    return
  }
  func.func @transform_0(%arg0: i32, %arg1: i32) -> (i32, i32) {
    %c0_i32 = arith.constant 0 : i32
    %c0_i32_0 = arith.constant 0 : i32
    return %arg1, %c0_i32 : i32, i32
  }
  func.func @transform_1(%arg0: i32, %arg1: i32) -> (i32, i32) {
    %0 = arith.muli %arg1, %arg0 : i32
    %c0_i32 = arith.constant 0 : i32
    %c0_i32_0 = arith.constant 0 : i32
    return %0, %c0_i32 : i32, i32
  }
}

</mosaic_0001>

<bundles_post_ra>
// kernel: tpu_custom_call.1
= control target key start
LH: loop header
LB: loop body
LE: loop exit
PB: predicated region body
PF: predicated region fallthrough
CT: control target
= control target key end

     0   :  { %6 = vsyncpa [#allocation5], 0  ;;  %s566_s0 = inlined_call_operand.hbm [shape: f32[16,128], index: 0, kind: input, shape index: {}]   ;;  %s567_s1 = inlined_call_operand.hbm [shape: f32[16,128], index: 1, kind: output, shape index: {}]  }
   0x1   :  { %7 = vsyncpa [#allocation6], 0 }
   0x2   :  { %9 = vsyncpa [#allocation6 + $0x1], 0  ;;  %s461_s6 = smov 0   ;;  %s463_s7 = smov 0  }
   0x3   :  { %s465_s8 = smov 0  }
   0x4 LB: > { %s284_s9 = sadd.s32 4294967295, %s442_s8   ;;  %s285_s10 = sadd.s32 4294967294, %s442_s8   ;;  %s442_s8 = sphi %s465_s8, %s15_s8   ;;  %s438_s7 = sphi %s463_s7, %s578_s7   ;;  %s434_s6 = sphi %s461_s6, %s577_s6  }
   0x5   : > { %s27_s11 = sadd.s32 1, %s438_s7  ;;  %p286_p0 = scmp.ge.s32.totalorder %s442_s8, 1 }
   0x6   : > { %p29_p1 = scmp.ge.s32.totalorder %s27_s11, 2  ;;  %p86_p2 = scmp.lt.s32.totalorder %s442_s8, 3 }
   0x7   : > { %p483_p3 = scmp.eq.s32.totalorder %s284_s9, 0  ;;  %s444_s14 = smov [#allocation4]  }
   0x8   : > { %s580_s11 = smov (%p29_p1, %s27_s11), 0  ;;  %p489_p4 = pnand %p286_p0, %p86_p2 }
   0x9   : > { %s571_s12 = scalar_select %p483_p3, 1, 0 }
   0xa   : > { %s572_s13 = scalar_select %p489_p4, 1, 0 }
   0xb   : > { %s101_s15 = sshll.u32 %s444_s14, 4  ;;  %p312_p5 = pneg %p489_p4  ;;  %s102_s15 = int_to_ptr.vmem [resolvable:$true] %s101_s15 }
   0xc   : > { %s358_s19 = scalar_lea.hbm %s566_s0, 256 }
   0xd   : > { %p497_p6 = pnand %p483_p3, %p312_p5  ;;  %p359_p7 = scmp.ne.s32.totalorder %s566_s0, %s358_s19 }
   0xe   : > { %p365_p11 = scmp.lt.u32.totalorder %s358_s19, %s566_s0 }
   0xf   : > { %p360_p8 = pneg %p497_p6 }
  0x11   : > { %p361_p9 = pnand %p360_p8, %p359_p7 }
  0x13   : > { %p362_p10 = pneg %p361_p9 }
  0x15   : > { %p367_p12 = pnand %p365_p11, %p362_p10 }
  0x17   : > { %370 = shalt.err (!%p367_p12)
}
  0x18   : > { %s371_s24 = scalar_lea.vmem %s102_s15, 256  ;;  %p379_p2 = scmp.lt.s32.totalorder %s102_s15, %s102_s15 }
  0x19   : > { %p372_p13 = scmp.ne.s32.totalorder %s102_s15, %s371_s24  ;;  %p380_p5 = scmp.lt.s32.totalorder %s371_s24, %s371_s24 }
  0x1b   : > { %p374_p0 = pnand %p372_p13, %p360_p8  ;;  %p381_p3 = por %p380_p5, %p379_p2 }
  0x1d   : > { %p375_p1 = pneg %p374_p0 }
  0x1f   : > { %p382_p4 = pnand %p381_p3, %p375_p1 }
  0x21   : > { %385 = shalt.err (!%p382_p4)
}
  0x22   : > { %s445_s25 = smov 128   ;;  %s446_s26 = smov 8  }
  0x23   : > { %315 = dma.hbm_to_vmem [thread:$0]  (!%p497_p6), %s566_s0, 256, %s102_s15, [#allocation5], %s445_s25, %s445_s25, %s446_s26  }
  0x24   : > { %p574_p7 = scmp.ne.s32.totalorder %s572_s13, 0 }
  0x25   : > { %p575_p9 = scmp.ne.s32.totalorder (!%p574_p7), %s571_s12, 0 }
  0x26   : > { %117 = sbr.rel (%p574_p7) target bundleno = 343 (0x157), region = 24 }
  0x2d   : > { %425 = dma.done.wait (%p575_p9), [#allocation5], 256  }
  0x2e   : > { %427 = vsyncadd (%p575_p9), [#allocation5], 4294967040  ;;  %p135_p3 = scmp.eq.s32.totalorder %s434_s6, 0 }
  0x2f   : > { %v447_v0 = vmov (%p135_p3), 0.0  }
  0x30   : > { %140 = sbr.rel (!%p135_p3) target bundleno = 55 (0x37), region = 32  ;;  %141 = vst [vmem:[#allocation2] sm:$0x1] (%p135_p3), %v447_v0 }
  0x37 PF: > { %p291_p4 = scmp.ne.s32.totalorder %s434_s6, 0 }
  0x38   : > { %v145_v1 = vld [vmem:[#allocation4] sm:$0xff] (!%p291_p4)  ;;  %v146_v2 = vld [vmem:[#allocation4 + $0x8] sm:$0xff] (!%p291_p4)  ;;  %v149_v11 = vld [vmem:[#allocation2] sm:$0x1] (!%p291_p4) }
  0x39   : > { %144 = sbr.rel (%p291_p4) target bundleno = 76 (0x4c), region = 36  ;;  %v147_v3 = vand.u32 (!%p291_p4), 2147483647, %v145_v1  ;;  %v148_v4 = vand.u32 (!%p291_p4), 2147483647, %v146_v2 }
  0x3b   : > { %v150_v5 = vadd.f32 (!%p291_p4), %v148_v4, %v147_v3 }
  0x3d   : > { %v151_v6 = vrot.slane (!%p291_p4), %v150_v5, 4 }
  0x3f   : > { %v152_v7 = vadd.f32 (!%p291_p4), %v151_v6, %v150_v5 }
  0x41   : > { %v153_v8 = vrot.slane %v152_v7, 2 }
  0x43   : > { %v154_v9 = vadd.f32 %v153_v8, %v152_v7 }
  0x45   : > { %v155_v10 = vrot.slane %v154_v9, 1 }
  0x47   : > { %v156_v12 = vadd.f32 %v155_v10, %v154_v9 }
  0x49   : > { %v157_v13 = vadd.f32 %v156_v12, %v149_v11 }
  0x4b   : > { %158 = vst [vmem:[#allocation2] sm:$0x1] %v157_v13 }
  0x4c PF: > { %160 = sbr.rel (!%p135_p3) target bundleno = 291 (0x123), region = 40  ;;  %vm163_vm0 = vcmask (%p135_p3), 1040384  }
  0x52   : > { %v161_v14 = vld [vmem:[#allocation2] sm:$0x1] (%p135_p3) }
  0x53   : > { %v162_v15 = vmul.f32 0.00068359374, %v161_v14 }
  0x55   : > { %v164_v16 = vsel %vm163_vm0, %v162_v15, 0.0 }
  0x56   : > { %165 = vadd.xlane.f32.xlu0 %v164_v16 }
  0xe3   : > { %v166_v17 = vpop.xlane.xlu0 %165 }
  0xe4   : > { %v167_v18 = vrot.slane %v166_v17, 4 }
  0xe6   : > { %v168_v19 = vadd.f32 %v167_v18, %v166_v17 }
  0xe8   : > { %v169_v20 = vrot.slane %v168_v19, 2 }
  0xea   : > { %v170_v21 = vadd.f32 %v169_v20, %v168_v19 }
  0xec   : > { %v171_v22 = vrot.slane %v170_v21, 1 }
  0xee   : > { %v172_v23 = vadd.f32 %v171_v22, %v170_v21 }
  0xf0   : > { %300 = vpush %v172_v23 }
 0x121   : > { %s301_s29 = spop %300 }
 0x122   : > { %175 = sst [smem:[#allocation3]] %s301_s29 }
 0x123 PF: > { %p292_p6 = scmp.ne.s32.totalorder %s434_s6, 1 }
 0x124   : > { %s180_s30 = sld [smem:[#allocation3]] (!%p292_p6)  ;;  %v181_v25 = vld [vmem:[#allocation4] sm:$0xff] (!%p292_p6)  ;;  %v182_v26 = vld [vmem:[#allocation4 + $0x8] sm:$0xff] (!%p292_p6) }
 0x125   : > { %179 = sbr.rel (%p292_p6) target bundleno = 319 (0x13f), region = 44 }
 0x12a   : > { %v183_v24 = vstv (!%p292_p6), %s180_s30 }
 0x12b   : > { %356 = vrcp.f32 (!%p292_p6), %v183_v24 }
 0x135   : > { %v357_v27 = vpop.eup %356 }
 0x136   : > { %v185_v28 = vmul.f32 %v357_v27, %v181_v25  ;;  %v186_v29 = vmul.f32 %v357_v27, %v182_v26 }
 0x138   : > { %v302_v30 = vround.rtne.f32 %v185_v28  ;;  %v303_v31 = vround.rtne.f32 %v186_v29 }
 0x13a   : > { %v293_v32 = vclamps-f32 %v302_v30, 1.0  ;;  %v294_v33 = vclamps-f32 %v303_v31, 1.0 }
 0x13c   : > { %v193_v34 = vmul.f32 %v293_v32, %v183_v24  ;;  %v194_v35 = vmul.f32 %v294_v33, %v183_v24 }
 0x13e   : > { %195 = vst [vmem:[#allocation7] sm:$0xff] %v193_v34  ;;  %196 = vst [vmem:[#allocation7 + $0x8] sm:$0xff] %v194_v35 }
 0x13f PF: > { %p532_p8 = scmp.eq.s32.totalorder %s284_s9, 1  ;;  %s448_s3 = smov [#allocation7]  }
 0x140   : > { %s212_s4 = sshll.u32 %s448_s3, 4  ;;  %s213_s4 = int_to_ptr.vmem [resolvable:$true] %s212_s4 }
 0x141   : > { %s386_s5 = scalar_lea.vmem %s213_s4, 256  ;;  %s392_s6 = scalar_lea.vmem %s213_s4, 512 }
 0x142   : > { %p387_p10 = scmp.ne.s32.totalorder %s213_s4, %s386_s5  ;;  %p393_p13 = scmp.lt.s32.totalorder %s213_s4, %s213_s4 }
 0x143   : > { %p394_p0 = scmp.lt.s32.totalorder %s392_s6, %s386_s5 }
 0x144   : > { %p388_p11 = pnand %p387_p10, %p532_p8 }
 0x145   : > { %p395_p1 = por %p394_p0, %p393_p13 }
 0x146   : > { %p389_p12 = pneg %p388_p11 }
 0x148   : > { %p396_p2 = pnand %p395_p1, %p389_p12 }
 0x14a   : > { %399 = shalt.err (!%p396_p2)
}
 0x14b   : > { %s400_s13 = scalar_lea.hbm %s567_s1, 256 }
 0x14c   : > { %p401_p5 = scmp.ne.s32.totalorder %s567_s1, %s400_s13  ;;  %p406_p3 = scmp.lt.u32.totalorder %s400_s13, %s567_s1 }
 0x14e   : > { %p402_p7 = pnand %p401_p5, %p532_p8 }
 0x150   : > { %p403_p9 = pneg %p402_p7 }
 0x152   : > { %p408_p4 = pnand %p406_p3, %p403_p9 }
 0x154   : > { %411 = shalt.err (!%p408_p4)
}
 0x155   : > { %s449_s18 = smov 128   ;;  %s450_s19 = smov 8  }
 0x156   : > { %309 = dma.vmem_to_hbm [thread:$0]  (%p532_p8), %s213_s4, 256, %s567_s1, [#allocation6], %s449_s18, %s449_s18, %s450_s19  }
 0x157 PF: > { %p323_p6 = scmp.ge.s32.totalorder %s442_s8, 2  ;;  %p324_p10 = scmp.eq.s32.totalorder %s285_s10, 1 }
 0x159   : > { %p317_p11 = pnand %p324_p10, %p323_p6 }
 0x15b   : > { %429 = dma.done.wait (!%p317_p11), [#allocation6], 256  }
 0x15c   : > { %431 = vsyncadd (!%p317_p11), [#allocation6], 4294967040  ;;  %s15_s8 = sadd.s32 1, %s442_s8   ;;  %s577_s6 = smov %s438_s7 }
 0x15d   : > { %p12_p12 = scmp.ge.s32.totalorder %s15_s8, 4   ;;  %s578_s7 = smov %s580_s11 }
 0x15f   :  { %14 = sbr.rel (!%p12_p12) target bundleno = 4 (0x4), region = 79 }
 0x166   :  { %233 = vsyncpa [#allocation5], 1 }
 0x167   :  { %235 = vsyncpa [#allocation5 + $0x1], 1 }
 0x168   :  { %236 = vsyncpa [#allocation6], 1 }
 0x169   :  { %238 = vsyncpa [#allocation6 + $0x1], 1 }

</bundles_post_ra>
